<compile_context>
chip_gen: v7x
topology: tpu7x:2x2x1
jax: 0.10.0
libtpu: 0.0.40
codegen_flags: <defaults>
</compile_context>

<pallas_src>
import jax
import jax.numpy as jnp
from jax.experimental import pallas as pl
from jax.experimental.pallas import tpu as pltpu


def _round_up(x, m):
    return (x + m - 1) // m * m


def deepnn_kernel(x_ref,
                  w1_ref, b1_ref,
                  w2_ref, b2_ref,
                  w3_ref, b3_ref,
                  w4_ref, b4_ref,
                  o_ref):
    """Fused forward pass over one (tb, input_dim) batch tile.

    Matmul inputs are bf16 (MXU-native); accumulation, bias, ReLU and sigmoid
    stay in f32 (safe on v5e, which has no bf16 VPU/EUP).
    """
    x = x_ref[...]                                            # (tb, D) bf16

    # fc1 + ReLU
    h = jnp.dot(x, w1_ref[...], preferred_element_type=jnp.float32)
    h = jnp.maximum(h + b1_ref[...], 0.0)                     # (tb, 128) f32

    # fc2 + ReLU
    h = jnp.dot(h.astype(jnp.bfloat16), w2_ref[...],
                preferred_element_type=jnp.float32)
    h = jnp.maximum(h + b2_ref[...], 0.0)                     # (tb, 64) f32

    # fc3 + ReLU
    h = jnp.dot(h.astype(jnp.bfloat16), w3_ref[...],
                preferred_element_type=jnp.float32)
    h = jnp.maximum(h + b3_ref[...], 0.0)                     # (tb, 32) f32

    # fc4 (out_features == 1): VPU broadcast-multiply by the (1, 32) weight
    # row and reduce over the lane axis (XLU) instead of a wasteful N=1 MXU
    # matmul.
    logits = jnp.sum(h * w4_ref[...], axis=-1, keepdims=True) + b4_ref[...]

    # sigmoid(z) = 1 / (1 + exp(-z)); exp and the approximate reciprocal both
    # ride the otherwise-idle EUP slot.
    o_ref[...] = pl.reciprocal(1.0 + jnp.exp(-logits),
                               approx=True).astype(o_ref.dtype)


def _pick_batch_tile(batch, input_dim, *, max_tile=2048,
                     vmem_budget_bytes=12 * 1024 * 1024):
    """Largest multiple-of-8 batch tile whose double-buffered working set fits
    comfortably under the smallest scoped-VMEM default across generations
    (16 MiB on v5e), while keeping >= 2 grid steps so the pipeline overlaps
    DMA with compute and the grid can shard across v7x's two TensorCores."""
    # weights (bf16, double-buffered by the pipeline) + biases / w4 row (f32)
    weight_bytes = 2 * 2 * (input_dim * 128 + 128 * 64 + 64 * 32)
    weight_bytes += 2 * 4 * (128 + 64 + 32 + 32 + 1)
    # per-row: double-buffered bf16 x tile + f32 intermediates + f32 output
    row_bytes = 2 * 2 * input_dim + 4 * (128 + 64 + 32 + 1) + 2 * 4
    tb = (vmem_budget_bytes - weight_bytes) // row_bytes
    tb = max(8, min(int(tb), max_tile))
    if batch >= 16:  # ensure at least two grid steps
        tb = min(tb, _round_up(-(-batch // 2), 8))
    return max(8, (tb // 8) * 8)


def deepnn_forward(x, params, *, batch_tile=None):
    """x: (B, input_dim) float32. params: f32 (in,out) weights, (1,out) biases."""
    B, D = x.shape
    tb = _pick_batch_tile(B, D) if batch_tile is None else batch_tile
    assert tb % 8 == 0, "batch tile must be a multiple of 8 (sublane rule)"

    # Pad the batch to a tile multiple so every grid step is a full block.
    Bp = _round_up(B, tb)
    if Bp != B:
        x = jnp.pad(x, ((0, Bp - B), (0, 0)))
    grid = (Bp // tb,)

    # bf16 operands for the MXU; accumulation stays f32 inside the kernel.
    x_b = x.astype(jnp.bfloat16)
    w1 = params["w1"].astype(jnp.bfloat16)
    w2 = params["w2"].astype(jnp.bfloat16)
    w3 = params["w3"].astype(jnp.bfloat16)
    w4_row = params["w4"].reshape(1, -1).astype(jnp.float32)   # (1, 32) VPU tail
    b1, b2, b3, b4 = params["b1"], params["b2"], params["b3"], params["b4"]

    # Constant index_maps: weights/biases are DMA'd once and stay VMEM-resident.
    full = lambda a: pl.BlockSpec(a.shape, lambda i: (0, 0))

    out = pl.pallas_call(
        deepnn_kernel,
        out_shape=jax.ShapeDtypeStruct((Bp, 1), jnp.float32),
        grid_spec=pltpu.PrefetchScalarGridSpec(
            num_scalar_prefetch=0,
            grid=grid,
            in_specs=[
                pl.BlockSpec((tb, D), lambda i: (i, 0)),  # only B-scaling stream
                full(w1), full(b1),
                full(w2), full(b2),
                full(w3), full(b3),
                full(w4_row), full(b4),
            ],
            out_specs=pl.BlockSpec((tb, 1), lambda i: (i, 0)),
        ),
        compiler_params=pltpu.CompilerParams(
            dimension_semantics=("parallel",)),
    )(x_b, w1, b1, w2, b2, w3, b3, w4_row, b4)

    return out[:B]


def init_params(key, input_dim):
    """Deterministic synthetic init (shapes match DeepNN's nn.Linear layers)."""
    dims = [(input_dim, 128), (128, 64), (64, 32), (32, 1)]
    params = {}
    for li, (fan_in, fan_out) in enumerate(dims, start=1):
        key, kw, kb = jax.random.split(key, 3)
        bound = 1.0 / jnp.sqrt(fan_in)
        # stored as (in, out) == PyTorch weight.T
        params[f"w{li}"] = jax.random.uniform(
            kw, (fan_in, fan_out), jnp.float32, -bound, bound)
        params[f"b{li}"] = jax.random.uniform(
            kb, (1, fan_out), jnp.float32, -bound, bound)
    return params


def reference_forward(x, params):
    h = jnp.maximum(x @ params["w1"] + params["b1"], 0.0)
    h = jnp.maximum(h @ params["w2"] + params["b2"], 0.0)
    h = jnp.maximum(h @ params["w3"] + params["b3"], 0.0)
    return jax.nn.sigmoid(h @ params["w4"] + params["b4"])


if __name__ == "__main__":
    key = jax.random.PRNGKey(0)
    batch, input_dim = 20, 32          # non-multiple-of-tile batch: exercises padding

    key, kx = jax.random.split(key)
    x = jax.random.normal(kx, (batch, input_dim), jnp.float32)
    params = init_params(key, input_dim)

    out = deepnn_forward(x, params, batch_tile=8)   # grid = 3 steps
    out = jax.block_until_ready(out)

    ref = reference_forward(x, params)              # f32 reference
    assert out.shape == (batch, 1), out.shape
    err = jnp.max(jnp.abs(out - ref))
    assert jnp.allclose(out, ref, atol=2e-2, rtol=2e-2), f"mismatch: max abs err {err}"

    print("KERNEL_OK")
</pallas_src>

<mosaic_0001>
module attributes {stable_mosaic.version = 11 : i64} {
  func.func @deepnn_kernel(%arg0: i32, %arg1: memref<8x32xbf16, #tpu.memory_space<vmem>>, %arg2: memref<32x128xbf16, #tpu.memory_space<vmem>>, %arg3: memref<1x128xf32, #tpu.memory_space<vmem>>, %arg4: memref<128x64xbf16, #tpu.memory_space<vmem>>, %arg5: memref<1x64xf32, #tpu.memory_space<vmem>>, %arg6: memref<64x32xbf16, #tpu.memory_space<vmem>>, %arg7: memref<1x32xf32, #tpu.memory_space<vmem>>, %arg8: memref<1x32xf32, #tpu.memory_space<vmem>>, %arg9: memref<1x1xf32, #tpu.memory_space<vmem>>, %arg10: memref<8x1xf32, #tpu.memory_space<vmem>>) attributes {dimension_semantics = [#tpu.dimension_semantics<parallel>], iteration_bounds = array<i64: 3>, scalar_prefetch = 0 : i64, scratch_operands = 0 : i64, tpu.core_type = #tpu.core_type<tc>, window_params = [{transform_indices = @transform_0, window_bounds = array<i64: 8, 32>}, {pipeline_mode = #tpu.pipeline_mode<synchronous>, transform_indices = @transform_1, window_bounds = array<i64: 32, 128>}, {pipeline_mode = #tpu.pipeline_mode<synchronous>, transform_indices = @transform_2, window_bounds = array<i64: 1, 128>}, {pipeline_mode = #tpu.pipeline_mode<synchronous>, transform_indices = @transform_3, window_bounds = array<i64: 128, 64>}, {pipeline_mode = #tpu.pipeline_mode<synchronous>, transform_indices = @transform_4, window_bounds = array<i64: 1, 64>}, {pipeline_mode = #tpu.pipeline_mode<synchronous>, transform_indices = @transform_5, window_bounds = array<i64: 64, 32>}, {pipeline_mode = #tpu.pipeline_mode<synchronous>, transform_indices = @transform_6, window_bounds = array<i64: 1, 32>}, {pipeline_mode = #tpu.pipeline_mode<synchronous>, transform_indices = @transform_7, window_bounds = array<i64: 1, 32>}, {pipeline_mode = #tpu.pipeline_mode<synchronous>, transform_indices = @transform_8, window_bounds = array<i64: 1, 1>}, {transform_indices = @transform_9, window_bounds = array<i64: 8, 1>}]} {
    %c0 = arith.constant 0 : index
    %c0_0 = arith.constant 0 : index
    %0 = vector.load %arg1[%c0, %c0_0] : memref<8x32xbf16, #tpu.memory_space<vmem>>, vector<8x32xbf16>
    %c0_1 = arith.constant 0 : index
    %c0_2 = arith.constant 0 : index
    %1 = vector.load %arg2[%c0_1, %c0_2] : memref<32x128xbf16, #tpu.memory_space<vmem>>, vector<32x128xbf16>
    %cst = arith.constant dense<0.000000e+00> : vector<8x128xf32>
    %2 = tpu.matmul %0, %1, %cst {dimension_numbers = #tpu.dot_dimension_numbers<[1], [0], [0], [1], [0, 0, 1, 1], [], []>} : vector<8x32xbf16>, vector<32x128xbf16>, vector<8x128xf32> -> vector<8x128xf32>
    %c0_3 = arith.constant 0 : index
    %c0_4 = arith.constant 0 : index
    %3 = vector.load %arg3[%c0_3, %c0_4] : memref<1x128xf32, #tpu.memory_space<vmem>>, vector<1x128xf32>
    %4 = vector.broadcast %3 : vector<1x128xf32> to vector<8x128xf32>
    %5 = arith.addf %2, %4 : vector<8x128xf32>
    %cst_5 = arith.constant 0.000000e+00 : f32
    %6 = vector.broadcast %cst_5 : f32 to vector<8x128xf32>
    %7 = arith.maximumf %5, %6 : vector<8x128xf32>
    %8 = arith.truncf %7 : vector<8x128xf32> to vector<8x128xbf16>
    %c0_6 = arith.constant 0 : index
    %c0_7 = arith.constant 0 : index
    %9 = vector.load %arg4[%c0_6, %c0_7] : memref<128x64xbf16, #tpu.memory_space<vmem>>, vector<128x64xbf16>
    %cst_8 = arith.constant dense<0.000000e+00> : vector<8x64xf32>
    %10 = tpu.matmul %8, %9, %cst_8 {dimension_numbers = #tpu.dot_dimension_numbers<[1], [0], [0], [1], [0, 0, 1, 1], [], []>} : vector<8x128xbf16>, vector<128x64xbf16>, vector<8x64xf32> -> vector<8x64xf32>
    %c0_9 = arith.constant 0 : index
    %c0_10 = arith.constant 0 : index
    %11 = vector.load %arg5[%c0_9, %c0_10] : memref<1x64xf32, #tpu.memory_space<vmem>>, vector<1x64xf32>
    %12 = vector.broadcast %11 : vector<1x64xf32> to vector<8x64xf32>
    %13 = arith.addf %10, %12 : vector<8x64xf32>
    %cst_11 = arith.constant 0.000000e+00 : f32
    %14 = vector.broadcast %cst_11 : f32 to vector<8x64xf32>
    %15 = arith.maximumf %13, %14 : vector<8x64xf32>
    %16 = arith.truncf %15 : vector<8x64xf32> to vector<8x64xbf16>
    %c0_12 = arith.constant 0 : index
    %c0_13 = arith.constant 0 : index
    %17 = vector.load %arg6[%c0_12, %c0_13] : memref<64x32xbf16, #tpu.memory_space<vmem>>, vector<64x32xbf16>
    %cst_14 = arith.constant dense<0.000000e+00> : vector<8x32xf32>
    %18 = tpu.matmul %16, %17, %cst_14 {dimension_numbers = #tpu.dot_dimension_numbers<[1], [0], [0], [1], [0, 0, 1, 1], [], []>} : vector<8x64xbf16>, vector<64x32xbf16>, vector<8x32xf32> -> vector<8x32xf32>
    %c0_15 = arith.constant 0 : index
    %c0_16 = arith.constant 0 : index
    %19 = vector.load %arg7[%c0_15, %c0_16] : memref<1x32xf32, #tpu.memory_space<vmem>>, vector<1x32xf32>
    %20 = vector.broadcast %19 : vector<1x32xf32> to vector<8x32xf32>
    %21 = arith.addf %18, %20 : vector<8x32xf32>
    %cst_17 = arith.constant 0.000000e+00 : f32
    %22 = vector.broadcast %cst_17 : f32 to vector<8x32xf32>
    %23 = arith.maximumf %21, %22 : vector<8x32xf32>
    %c0_18 = arith.constant 0 : index
    %c0_19 = arith.constant 0 : index
    %24 = vector.load %arg8[%c0_18, %c0_19] : memref<1x32xf32, #tpu.memory_space<vmem>>, vector<1x32xf32>
    %25 = vector.broadcast %24 : vector<1x32xf32> to vector<8x32xf32>
    %26 = arith.mulf %23, %25 : vector<8x32xf32>
    %cst_20 = arith.constant dense<0.000000e+00> : vector<8xf32>
    %27 = vector.multi_reduction <add>, %26, %cst_20 [1] : vector<8x32xf32> to vector<8xf32>
    %28 = vector.shape_cast %27 : vector<8xf32> to vector<8x1xf32>
    %c0_21 = arith.constant 0 : index
    %c0_22 = arith.constant 0 : index
    %29 = vector.load %arg9[%c0_21, %c0_22] : memref<1x1xf32, #tpu.memory_space<vmem>>, vector<1x1xf32>
    %30 = vector.broadcast %29 : vector<1x1xf32> to vector<8x1xf32>
    %31 = arith.addf %28, %30 : vector<8x1xf32>
    %cst_23 = arith.constant 0.000000e+00 : f32
    %32 = vector.broadcast %cst_23 : f32 to vector<8x1xf32>
    %33 = arith.subf %32, %31 : vector<8x1xf32>
    %34 = math.exp %33 : vector<8x1xf32>
    %cst_24 = arith.constant 1.000000e+00 : f32
    %35 = vector.broadcast %cst_24 : f32 to vector<8x1xf32>
    %36 = arith.addf %35, %34 : vector<8x1xf32>
    %37 = tpu.reciprocal %36 {approx = true} : vector<8x1xf32> -> vector<8x1xf32>
    %c0_25 = arith.constant 0 : index
    %c0_26 = arith.constant 0 : index
    %38 = vector.load %arg10[%c0_25, %c0_26] : memref<8x1xf32, #tpu.memory_space<vmem>>, vector<8x1xf32>
    tpu.vector_store %arg10[%c0_25, %c0_26], %37 {strides = array<i32>} : memref<8x1xf32, #tpu.memory_space<vmem>>, vector<8x1xf32>,
    return
  }
  func.func @transform_0(%arg0: i32) -> (i32, i32) {
    %c0_i32 = arith.constant 0 : i32
    %c0_i32_0 = arith.constant 0 : i32
    return %arg0, %c0_i32 : i32, i32
  }
  func.func @transform_1(%arg0: i32) -> (i32, i32) {
    %c0_i32 = arith.constant 0 : i32
    %c0_i32_0 = arith.constant 0 : i32
    %c0_i32_1 = arith.constant 0 : i32
    return %c0_i32, %c0_i32_0 : i32, i32
  }
  func.func @transform_2(%arg0: i32) -> (i32, i32) {
    %c0_i32 = arith.constant 0 : i32
    %c0_i32_0 = arith.constant 0 : i32
    %c0_i32_1 = arith.constant 0 : i32
    return %c0_i32, %c0_i32_0 : i32, i32
  }
  func.func @transform_3(%arg0: i32) -> (i32, i32) {
    %c0_i32 = arith.constant 0 : i32
    %c0_i32_0 = arith.constant 0 : i32
    %c0_i32_1 = arith.constant 0 : i32
    return %c0_i32, %c0_i32_0 : i32, i32
  }
  func.func @transform_4(%arg0: i32) -> (i32, i32) {
    %c0_i32 = arith.constant 0 : i32
    %c0_i32_0 = arith.constant 0 : i32
    %c0_i32_1 = arith.constant 0 : i32
    return %c0_i32, %c0_i32_0 : i32, i32
  }
  func.func @transform_5(%arg0: i32) -> (i32, i32) {
    %c0_i32 = arith.constant 0 : i32
    %c0_i32_0 = arith.constant 0 : i32
    %c0_i32_1 = arith.constant 0 : i32
    return %c0_i32, %c0_i32_0 : i32, i32
  }
  func.func @transform_6(%arg0: i32) -> (i32, i32) {
    %c0_i32 = arith.constant 0 : i32
    %c0_i32_0 = arith.constant 0 : i32
    %c0_i32_1 = arith.constant 0 : i32
    return %c0_i32, %c0_i32_0 : i32, i32
  }
  func.func @transform_7(%arg0: i32) -> (i32, i32) {
    %c0_i32 = arith.constant 0 : i32
    %c0_i32_0 = arith.constant 0 : i32
    %c0_i32_1 = arith.constant 0 : i32
    return %c0_i32, %c0_i32_0 : i32, i32
  }
  func.func @transform_8(%arg0: i32) -> (i32, i32) {
    %c0_i32 = arith.constant 0 : i32
    %c0_i32_0 = arith.constant 0 : i32
    %c0_i32_1 = arith.constant 0 : i32
    return %c0_i32, %c0_i32_0 : i32, i32
  }
  func.func @transform_9(%arg0: i32) -> (i32, i32) {
    %c0_i32 = arith.constant 0 : i32
    %c0_i32_0 = arith.constant 0 : i32
    return %arg0, %c0_i32 : i32, i32
  }
}

</mosaic_0001>

<bundles_post_ra>
// kernel: tpu_custom_call.1
= control target key start
LH: loop header
LB: loop body
LE: loop exit
PB: predicated region body
PF: predicated region fallthrough
CT: control target
= control target key end

     0   :  { %s855_s11 = smov 0   ;;  %s935_s0 = inlined_call_operand.vmem [shape: bf16[24,32], index: 0, kind: input, shape index: {}]   ;;  %s936_s1 = inlined_call_operand.vmem [shape: bf16[32,128], index: 1, kind: input, shape index: {}]   ;;  %s937_s2 = inlined_call_operand.vmem [shape: f32[1,128], index: 2, kind: input, shape index: {}]   ;;  %s938_s3 = inlined_call_operand.vmem [shape: bf16[128,64], index: 3, kind: input, shape index: {}]   ;;  %s939_s4 = inlined_call_operand.vmem [shape: f32[1,64], index: 4, kind: input, shape index: {}]   ;;  %s940_s5 = inlined_call_operand.vmem [shape: bf16[64,32], index: 5, kind: input, shape index: {}]   ;;  %s941_s6 = inlined_call_operand.vmem [shape: f32[1,32], index: 6, kind: input, shape index: {}]   ;;  %s942_s7 = inlined_call_operand.vmem [shape: f32[1,32], index: 7, kind: input, shape index: {}]   ;;  %s943_s8 = inlined_call_operand.<no memory space> [shape: f32[1,1], index: 8, kind: input, shape index: {}]   ;;  %s944_s9 = inlined_call_operand.vmem [shape: f32[24,1], index: 9, kind: output, shape index: {}]  }
   0x1   :  { %v14_v0 = vstv %s943_s8 }
   0x2   :  { %15 = vst [vmem:[#allocation2] sm:$0x1] %v14_v0 }
   0x3 LB: > { %s677_s12 = sadd.s32 4294967295, %s798_s11   ;;  %p681_p0 = scmp.ge.s32.totalorder %s798_s11, 1  ;;  %s798_s11 = sphi %s855_s11, %s21_s11  }
   0x4   : > { %p288_p1 = scmp.lt.s32.totalorder %s798_s11, 4 }
   0x6   : > { %p289_p2 = pnand %p681_p0, %p288_p1 }
   0x7   : > { %v774_v1 = vld [vmem:[%s936_s1] sm:$0xff] (!%p289_p2)   ;;  %v800_v2 = vmov (!%p289_p2), 0.0   ;;  %v775_v3 = vld [vmem:[%s936_s1 + $0x8] sm:$0xff] (!%p289_p2)   ;;  %vm801_vm0 = vmmov (!%p289_p2), 0   ;;  %p322_p3 = scmp.lt.s32.totalorder (!%p289_p2), %s677_s12, 2  ;;  %vm355_vm1 = vcmask (!%p289_p2), 261120  }
   0x8   : > { %292 = sbr.rel (%p289_p2) target bundleno = 847 (0x34f), region = 56  ;;  %724 = vmatprep.subr.bf16.mxu0 (!%p289_p2), %v800_v2  ;;  %732 = vmatprep.subr.bf16.mxu1 (!%p289_p2), %v800_v2  ;;  %v776_v4 = vld [vmem:[%s938_s3] sm:$0xff] (!%p289_p2)   ;;  %v777_v5 = vld [vmem:[%s938_s3 + $0x8] sm:$0xff] (!%p289_p2)   ;;  %v778_v7 = vld [vmem:[%s938_s3 + $0x10] sm:$0xff] (!%p289_p2)   ;;  %vm553_vm2 = vcmask (!%p289_p2), 523264   ;;  %vm622_vm3 = vcmask (!%p289_p2), 7168  }
   0x9   : > { %725 = vmatpush3.bf16.msra.mxu0 (!%p289_p2), %v774_v1  ;;  %728 = vmatprep.mubr.msk.bf16.mxu0 (!%p289_p2), %vm801_vm0, %v800_v2  ;;  %v779_v8 = vld [vmem:[%s938_s3 + $0x18] sm:$0xff] (!%p289_p2)   ;;  %v780_v9 = vld [vmem:[%s938_s3 + $0x20] sm:$0xff] (!%p289_p2)   ;;  %v781_v10 = vld [vmem:[%s938_s3 + $0x28] sm:$0xff] (!%p289_p2)  }
   0xa   : > { %726 = vmatprep.subr.bf16.mxu0 (!%p289_p2), %v800_v2  ;;  %748 = vmatprep.mubr.msk.bf16.mxu1 (!%p289_p2), %vm801_vm0, %v800_v2  ;;  %v782_v11 = vld [vmem:[%s938_s3 + $0x30] sm:$0xff] (!%p289_p2)   ;;  %v783_v12 = vld [vmem:[%s938_s3 + $0x38] sm:$0xff] (!%p289_p2)   ;;  %v784_v13 = vld [vmem:[%s940_s5] sm:$0xff] (!%p289_p2)  }
   0xb   : > { %733 = vmatpush3.bf16.msra.mxu1 (!%p289_p2), %v776_v4  ;;  %v785_v14 = vld [vmem:[%s940_s5 + $0x8] sm:$0xff] (!%p289_p2)   ;;  %v684_v15 = vld [vmem:[%s937_s2] ss:$0 sm:$0xff] (!%p289_p2)  ;;  %v786_v23 = vld [vmem:[%s940_s5 + $0x10] sm:$0xff] (!%p289_p2)  }
   0xc   : > { %734 = vmatprep.subr.bf16.mxu1 (!%p289_p2), %v800_v2  ;;  %v787_v24 = vld [vmem:[%s940_s5 + $0x18] sm:$0xff] (!%p289_p2)   ;;  %v688_v25 = vld [vmem:[%s939_s4] ss:$0 sm:$0xff] (!%p289_p2) }
   0xd   : > { %727 = vmatpush3.bf16.msra.mxu0 (!%p289_p2), %v775_v3  ;;  %v697_v33 = vld [vmem:[%s941_s6] ss:$0 sm:$0xff] (!%p289_p2) }
   0xe   : > { %752 = vmatprep.subr.bf16.mxu0 (!%p289_p2), %v800_v2  ;;  %v703_v38 = vld [vmem:[%s942_s7] ss:$0 sm:$0xff] (!%p289_p2) }
   0xf   : > { %s946_s12 = smov (!%p322_p3, %s677_s12), 2  ;;  %735 = vmatpush3.bf16.msra.mxu1 %v777_v5  ;;  %v704_v43 = vld [vmem:[#allocation2] ss:$0 sm:$0xff] }
  0x10   : > { %s682_s20 = sshll.u32 %s946_s12, 2  ;;  %736 = vmatprep.subr.bf16.mxu1 %v800_v2  ;;  %s683_s13 = sshll.u32 %s946_s12, 3 }
  0x11   : > { %s325_s23 = scalar_lea.vmem %s935_s0, %s682_s20  ;;  %s329_s15 = scalar_lea.vmem %s944_s9, %s683_s13 }
  0x12   : > { %v331_v6 = vld [vmem:[%s325_s23] sm:$0xf] }
  0x13   : > { %729 = vmatmul.mubr.msk.bf16.vlgmr.msra.gmra.mrb[0].mxu0 %vm355_vm1, %v331_v6  ;;  %737 = vmatpush3.bf16.msra.mxu1 %v778_v7 }
  0x14   : > { %760 = vmatprep.mubr.msk.bf16.mxu0 %vm801_vm0, %v800_v2  ;;  %738 = vmatprep.subr.bf16.mxu1 %v800_v2 }
  0x15   : > { %753 = vmatpush3.bf16.msra.mxu0 %v784_v13 }
  0x16   : > { %754 = vmatprep.subr.bf16.mxu0 %v800_v2 }
  0x17   : > { %739 = vmatpush3.bf16.msra.mxu1 %v779_v8 }
  0x18   : > { %740 = vmatprep.subr.bf16.mxu1 %v800_v2 }
  0x19   : > { %755 = vmatpush3.bf16.msra.mxu0 %v785_v14 }
  0x1a   : > { %756 = vmatprep.subr.bf16.mxu0 %v800_v2 }
  0x1b   : > { %741 = vmatpush3.bf16.msra.mxu1 %v780_v9 }
  0x1c   : > { %742 = vmatprep.subr.bf16.mxu1 %v800_v2 }
  0x1d   : > { %757 = vmatpush3.bf16.msra.mxu0 %v786_v23 }
  0x1e   : > { %758 = vmatprep.subr.bf16.mxu0 %v800_v2 }
  0x1f   : > { %743 = vmatpush3.bf16.msra.mxu1 %v781_v10 }
  0x20   : > { %744 = vmatprep.subr.bf16.mxu1 %v800_v2 }
  0x21   : > { %759 = vmatpush3.bf16.msra.mxu0 %v787_v24 }
  0x23   : > { %745 = vmatpush3.bf16.msra.mxu1 %v782_v11 }
  0x24   : > { %746 = vmatprep.subr.bf16.mxu1 %v800_v2 }
  0x27   : > { %747 = vmatpush3.bf16.msra.mxu1 %v783_v12 }
  0xe6   : > { %v393_v16 = vpop.f32.mrb[0].mxu0 }
  0xe7   : > { %v394_v17 = vadd.f32 %v684_v15, %v393_v16  ;;  %v730_v18 = vpop.f32.mrb[1].mxu0 }
  0xe8   : > { %v396_v19 = vpop.f32.mrb[2].mxu0 }
  0xe9   : > { %v399_v20 = vmax.f32 %v394_v17, 0.0  ;;  %v731_v21 = vpop.f32.mrb[3].mxu0 }
  0xeb   : > { %v400_v22 = vpack.c.bf16 %v399_v20, %v399_v20 }
  0xed   : > { %749 = vmatmul.mubr.bf16.vlgmr.msra.gmra.mrb[0].mxu1 %v400_v22 }
 0x1c0   : > { %v506_v26 = vpop.f32.mrb[0].mxu1 }
 0x1c1   : > { %v507_v27 = vadd.f32 %v688_v25, %v506_v26  ;;  %v750_v28 = vpop.f32.mrb[1].mxu1 }
 0x1c2   : > { %v509_v29 = vpop.f32.mrb[2].mxu1 }
 0x1c3   : > { %v512_v30 = vmax.f32 %v507_v27, 0.0  ;;  %v751_v31 = vpop.f32.mrb[3].mxu1 }
 0x1c5   : > { %v513_v32 = vpack.c.bf16 %v512_v30, %v512_v30 }
 0x1c7   : > { %761 = vmatmul.mubr.msk.bf16.vlgmr.msra.gmra.mrb[4].mxu0 %vm553_vm2, %v513_v32 }
 0x29a   : > { %v591_v34 = vpop.f32.mrb[4].mxu0 }
 0x29b   : > { %v592_v35 = vadd.f32 %v697_v33, %v591_v34  ;;  %v762_v36 = vpop.f32.mrb[5].mxu0 }
 0x29c   : > { %v594_v37 = vpop.f32.mrb[6].mxu0 }
 0x29d   : > { %v597_v39 = vmax.f32 %v592_v35, 0.0  ;;  %v763_v40 = vpop.f32.mrb[7].mxu0 }
 0x29f   : > { %v605_v41 = vmul.f32 %v703_v38, %v597_v39 }
 0x2a1   : > { %v606_v42 = vsel %vm355_vm1, %v605_v41, 0.0 }
 0x2a2   : > { %607 = vadd.xlane.f32.xlu0 %v606_v42 }
 0x32f   : > { %v608_v44 = vpop.xlane.xlu0 %607 }
 0x330   : > { %v616_v45 = vadd.f32 %v704_v43, %v608_v44 }
 0x332   : > { %v617_v46 = vsub.f32 0.0, %v616_v45 }
 0x334   : > { %v618_v47 = vmul.f32 1.442695, %v617_v46 }
 0x336   : > { %788 = vpow2.f32 %v618_v47 }
 0x340   : > { %v789_v48 = vpop.eup %788 }
 0x341   : > { %v620_v49 = vadd.f32 1.0, %v789_v48 }
 0x343   : > { %790 = vrcp.f32 %v620_v49 }
 0x34d   : > { %v791_v50 = vpop.eup %790 }
 0x34e   : > { %623 = vst.msk [vmem:[%s329_s15] sm:$0xff] %vm622_vm3, %v791_v50 }
 0x34f PF: > { %s21_s11 = sadd.s32 1, %s798_s11  }
 0x350   : > { %p18_p4 = scmp.ge.s32.totalorder %s21_s11, 5  }
 0x352   :  { %20 = sbr.rel (!%p18_p4) target bundleno = 3 (0x3), region = 86 }

</bundles_post_ra>
